<compile_context>
chip_gen: v7x
topology: tpu7x:2x2x1
jax: 0.10.0
libtpu: 0.0.40
codegen_flags: <defaults>
</compile_context>

<pallas_src>
import jax
import jax.numpy as jnp
from jax.experimental import pallas as pl
from jax.experimental.pallas import tpu as pltpu


_LEVEL_WEIGHTS = (0.16, 0.12, 0.05)      # level-1, level-2, level-3 weights


def _dwt_loss_kernel(x_ref, y_ref, sums_ref):
    """Fused 3-level Haar DWT |.|-sum kernel for one (tn, th, Wpad) block.

    For each level it writes the unscaled sum of |HL|+|LH|+|HH| as a
    lane-resident (1, Wpad) row of the output block (the 0.5^level factor,
    per-level weight and mean normalisation are scalar math in the wrapper).
    """
    tn, th, w = x_ref.shape

    # Upcast in-kernel (HBM traffic stays at the native input width).
    d = x_ref[...].astype(jnp.float32) - y_ref[...].astype(jnp.float32)

    # Parity masks, hoisted out of the level loop; applied as an f32 multiply.
    row = jax.lax.broadcasted_iota(jnp.int32, (th, w), 0)
    col = jax.lax.broadcasted_iota(jnp.int32, (th, w), 1)
    rc = row | col
    masks = [((rc & (2 * (1 << l) - 1)) == 0).astype(jnp.float32)[None]
             for l in range(3)]

    for lvl in range(3):
        s = 1 << lvl                                    # polyphase step
        # Quad members at a valid anchor (r, c):
        #   p1=d[r,c]  p2=d[r+s,c]  p3=d[r,c+s]  p4=d[r+s,c+s]
        # Shifts are XLU rotations; the wrapped tail only lands on rows/cols
        # the parity mask discards (th % 8 == 0, w % 128 == 0 per tile).
        dr = pltpu.roll(d, shift=th - s, axis=1)        # d[r+s, c]
        a_sum = d + dr                                  # p1 + p2
        c_dif = dr - d                                  # p2 - p1
        a_sumc = pltpu.roll(a_sum, shift=w - s, axis=2)  # p3 + p4
        c_difc = pltpu.roll(c_dif, shift=w - s, axis=2)  # p4 - p3

        hl = a_sumc - a_sum                             # -p1 - p2 + p3 + p4
        lh = c_dif + c_difc                             # -p1 + p2 - p3 + p4
        hh = c_difc - c_dif                             #  p1 - p2 - p3 + p4

        # HL/LH/HH share the same weight within a level -> one reduction.
        t = (jnp.abs(hl) + jnp.abs(lh) + jnp.abs(hh)) * masks[lvl]

        # Lane-resident partial sum: reduce over batch*rows only, keep lanes.
        part = jnp.sum(t.reshape(tn * th, w), axis=0, keepdims=True)  # (1, w)
        sums_ref[0, 0, lvl:lvl + 1, :] = part

        if lvl < 2:
            # Unscaled LL stays in registers/VMEM and feeds the next level
            # (valid at positions that are multiples of 2*s).
            d = a_sum + a_sumc


def _largest_divisor(n, cap, multiple_of=1):
    """Largest divisor of n that is a multiple of `multiple_of` and <= cap
    (falls back to `multiple_of`)."""
    best = multiple_of
    for c in range(multiple_of, min(n, max(cap, multiple_of)) + 1, multiple_of):
        if n % c == 0:
            best = c
    return best


def _vmem_capacity_bytes():
    """Physical VMEM of the current TPU generation (conservative fallback)."""
    try:
        return int(pltpu.get_tpu_info().vmem_capacity_bytes)
    except Exception:
        return 64 * 1024 * 1024          # assume v7x-sized VMEM if unknown


@jax.jit
def dwt_loss(x, target):
    """Pallas implementation of DWT_LOSS.forward (x, target are NCHW)."""
    b, c, h, w = x.shape
    assert h % 8 == 0 and w % 8 == 0, (
        "DWT_LOSS requires H and W divisible by 8 (3 Haar levels).")
    n = b * c

    # Free contiguous reshapes; no dtype cast here.
    xf = x.reshape(n, h, w)
    tf = target.reshape(n, h, w)

    # Zero-pad W up to a multiple of 128 so every in-kernel roll/store is
    # lane-tile aligned.  Padded columns contribute exactly 0 at every level
    # (all-zero quads), and the normalisation below uses the original W.
    w_pad = ((w + 127) // 128) * 128
    if w_pad != w:
        xf = jnp.pad(xf, ((0, 0), (0, 0), (0, w_pad - w)))
        tf = jnp.pad(tf, ((0, 0), (0, 0), (0, w_pad - w)))

    # Generation-aware block cap + VMEM limit (v5e/v6e: 128 MiB, v7x: 64 MiB).
    vmem_cap = _vmem_capacity_bytes()
    if vmem_cap >= 96 * 1024 * 1024:
        max_block_elems = 512 * 1024          # 2 MiB (f32) per input block
        vmem_limit = 96 * 1024 * 1024
    else:
        max_block_elems = 256 * 1024          # 1 MiB per input block on v7x
        vmem_limit = 48 * 1024 * 1024

    # th a multiple of 8 (keeps all 3 levels intra-tile).
    th = _largest_divisor(h, max(8, max_block_elems // w_pad), multiple_of=8)
    tn = _largest_divisor(n, max(1, max_block_elems // (th * w_pad)),
                          multiple_of=1)
    if (n // tn) * (h // th) == 1:
        # v7x has 2 TensorCores sharded over "parallel" grid axes; make sure
        # there are >= 2 programs whenever the problem allows it.
        if n > 1:
            tn = _largest_divisor(n, n // 2, multiple_of=1)
        elif h > 8:
            th = _largest_divisor(h, max(8, h // 2), multiple_of=8)
    gn, gh = n // tn, h // th

    in_bytes = xf.size * xf.dtype.itemsize + tf.size * tf.dtype.itemsize
    out_bytes = gn * gh * 3 * w_pad * 4

    partial = pl.pallas_call(
        _dwt_loss_kernel,
        out_shape=jax.ShapeDtypeStruct((gn, gh, 3, w_pad), jnp.float32),
        grid=(gn, gh),
        in_specs=[
            pl.BlockSpec((tn, th, w_pad), lambda i, j: (i, j, 0)),
            pl.BlockSpec((tn, th, w_pad), lambda i, j: (i, j, 0)),
        ],
        out_specs=pl.BlockSpec((1, 1, 3, w_pad), lambda i, j: (i, j, 0, 0)),
        compiler_params=pltpu.CompilerParams(
            dimension_semantics=("parallel", "parallel"),
            vmem_limit_bytes=vmem_limit,
        ),
        cost_estimate=pl.CostEstimate(
            flops=int(50 * n * h * w_pad),
            transcendentals=0,
            bytes_accessed=int(in_bytes + out_bytes),
        ),
    )(xf, tf)

    # Reduce the per-block lane-vector partial sums and fold in the
    # 0.5^level Haar factor, per-level weights and L1 mean normalisation.
    totals = jnp.sum(partial, axis=(0, 1, 3))          # (3,)
    loss = jnp.float32(0.0)
    for lvl in range(1, 4):
        scale = 0.5 ** lvl                             # Haar 1/2 per level
        cnt = n * (h >> lvl) * (w >> lvl)              # original-W subband size
        loss = loss + (_LEVEL_WEIGHTS[lvl - 1] * scale / cnt) * totals[lvl - 1]
    return loss


# ----------------------- pure-JAX reference (for checking) -----------------
def _dwt_init_ref(x):
    x01 = x[:, :, 0::2, :] / 2
    x02 = x[:, :, 1::2, :] / 2
    x1 = x01[:, :, :, 0::2]
    x2 = x02[:, :, :, 0::2]
    x3 = x01[:, :, :, 1::2]
    x4 = x02[:, :, :, 1::2]
    return (x1 + x2 + x3 + x4, -x1 - x2 + x3 + x4,
            -x1 + x2 - x3 + x4, x1 - x2 - x3 + x4)


def _l1(a, b):
    return jnp.mean(jnp.abs(a - b))


def dwt_loss_ref(x, target):
    x_ll1, x_hl1, x_lh1, x_hh1 = _dwt_init_ref(x)
    y_ll1, y_hl1, y_lh1, y_hh1 = _dwt_init_ref(target)
    x_ll2, x_hl2, x_lh2, x_hh2 = _dwt_init_ref(x_ll1)
    y_ll2, y_hl2, y_lh2, y_hh2 = _dwt_init_ref(y_ll1)
    x_ll3, x_hl3, x_lh3, x_hh3 = _dwt_init_ref(x_ll2)
    y_ll3, y_hl3, y_lh3, y_hh3 = _dwt_init_ref(y_ll2)
    return (0.12 * _l1(x_hl2, y_hl2) + 0.12 * _l1(x_lh2, y_lh2) + 0.12 * _l1(x_hh2, y_hh2)
            + 0.05 * _l1(x_hl3, y_hl3) + 0.05 * _l1(x_lh3, y_lh3) + 0.05 * _l1(x_hh3, y_hh3)
            + 0.16 * _l1(x_lh1, y_lh1) + 0.16 * _l1(x_hl1, y_hl1) + 0.16 * _l1(x_hh1, y_hh1))


if __name__ == "__main__":
    key = jax.random.PRNGKey(0)
    kx, ky = jax.random.split(key)
    # B=2, C=4, H=W=16 (H, W must be divisible by 8 for 3 DWT levels)
    x = jax.random.normal(kx, (2, 4, 16, 16), dtype=jnp.float32)
    target = jax.random.normal(ky, (2, 4, 16, 16), dtype=jnp.float32)

    out = dwt_loss(x, target)
    out = jax.block_until_ready(out)

    ref = dwt_loss_ref(x, target)
    assert jnp.allclose(out, ref, rtol=1e-5, atol=1e-5), (out, ref)

    print("KERNEL_OK")
</pallas_src>

<mosaic_0001>
module attributes {stable_mosaic.version = 11 : i64} {
  func.func @_dwt_loss_kernel(%arg0: i32, %arg1: i32, %arg2: memref<4x16x128xf32, #tpu.memory_space<vmem>>, %arg3: memref<4x16x128xf32, #tpu.memory_space<vmem>>, %arg4: memref<1x1x3x128xf32, #tpu.memory_space<vmem>>) attributes {dimension_semantics = [#tpu.dimension_semantics<parallel>, #tpu.dimension_semantics<parallel>], iteration_bounds = array<i64: 2, 1>, scalar_prefetch = 0 : i64, scratch_operands = 0 : i64, tpu.core_type = #tpu.core_type<tc>, window_params = [{transform_indices = @transform_0, window_bounds = array<i64: 4, 16, 128>}, {transform_indices = @transform_1, window_bounds = array<i64: 4, 16, 128>}, {transform_indices = @transform_2, window_bounds = array<i64: 1, 1, 3, 128>}]} {
    %c0 = arith.constant 0 : index
    %c0_0 = arith.constant 0 : index
    %c0_1 = arith.constant 0 : index
    %0 = vector.load %arg2[%c0, %c0_0, %c0_1] : memref<4x16x128xf32, #tpu.memory_space<vmem>>, vector<4x16x128xf32>
    %c0_2 = arith.constant 0 : index
    %c0_3 = arith.constant 0 : index
    %c0_4 = arith.constant 0 : index
    %1 = vector.load %arg3[%c0_2, %c0_3, %c0_4] : memref<4x16x128xf32, #tpu.memory_space<vmem>>, vector<4x16x128xf32>
    %2 = arith.subf %0, %1 : vector<4x16x128xf32>
    %3 = tpu.iota {dimensions = array<i32: 0>} : vector<16x128xi32>
    %4 = tpu.iota {dimensions = array<i32: 1>} : vector<16x128xi32>
    %5 = arith.ori %3, %4 : vector<16x128xi32>
    %c1_i32 = arith.constant 1 : i32
    %6 = vector.broadcast %c1_i32 : i32 to vector<16x128xi32>
    %7 = arith.andi %5, %6 : vector<16x128xi32>
    %c0_i32 = arith.constant 0 : i32
    %8 = vector.broadcast %c0_i32 : i32 to vector<16x128xi32>
    %9 = arith.cmpi eq, %7, %8 : vector<16x128xi32>
    %10 = arith.extui %9 : vector<16x128xi1> to vector<16x128xi32>
    %11 = arith.sitofp %10 : vector<16x128xi32> to vector<16x128xf32>
    %12 = vector.shape_cast %11 : vector<16x128xf32> to vector<1x16x128xf32>
    %c3_i32 = arith.constant 3 : i32
    %13 = vector.broadcast %c3_i32 : i32 to vector<16x128xi32>
    %14 = arith.andi %5, %13 : vector<16x128xi32>
    %c0_i32_5 = arith.constant 0 : i32
    %15 = vector.broadcast %c0_i32_5 : i32 to vector<16x128xi32>
    %16 = arith.cmpi eq, %14, %15 : vector<16x128xi32>
    %17 = arith.extui %16 : vector<16x128xi1> to vector<16x128xi32>
    %18 = arith.sitofp %17 : vector<16x128xi32> to vector<16x128xf32>
    %19 = vector.shape_cast %18 : vector<16x128xf32> to vector<1x16x128xf32>
    %c7_i32 = arith.constant 7 : i32
    %20 = vector.broadcast %c7_i32 : i32 to vector<16x128xi32>
    %21 = arith.andi %5, %20 : vector<16x128xi32>
    %c0_i32_6 = arith.constant 0 : i32
    %22 = vector.broadcast %c0_i32_6 : i32 to vector<16x128xi32>
    %23 = arith.cmpi eq, %21, %22 : vector<16x128xi32>
    %24 = arith.extui %23 : vector<16x128xi1> to vector<16x128xi32>
    %25 = arith.sitofp %24 : vector<16x128xi32> to vector<16x128xf32>
    %26 = vector.shape_cast %25 : vector<16x128xf32> to vector<1x16x128xf32>
    %c15_i32 = arith.constant 15 : i32
    %27 = tpu.dynamic_rotate %2 by %c15_i32 dim 1 : vector<4x16x128xf32>, i32 -> vector<4x16x128xf32>
    %28 = arith.addf %2, %27 : vector<4x16x128xf32>
    %29 = arith.subf %27, %2 : vector<4x16x128xf32>
    %c127_i32 = arith.constant 127 : i32
    %30 = tpu.dynamic_rotate %28 by %c127_i32 dim 2 : vector<4x16x128xf32>, i32 -> vector<4x16x128xf32>
    %c127_i32_7 = arith.constant 127 : i32
    %31 = tpu.dynamic_rotate %29 by %c127_i32_7 dim 2 : vector<4x16x128xf32>, i32 -> vector<4x16x128xf32>
    %32 = arith.subf %30, %28 : vector<4x16x128xf32>
    %33 = arith.addf %29, %31 : vector<4x16x128xf32>
    %34 = arith.subf %31, %29 : vector<4x16x128xf32>
    %35 = math.absf %32 : vector<4x16x128xf32>
    %36 = math.absf %33 : vector<4x16x128xf32>
    %37 = arith.addf %35, %36 : vector<4x16x128xf32>
    %38 = math.absf %34 : vector<4x16x128xf32>
    %39 = arith.addf %37, %38 : vector<4x16x128xf32>
    %40 = vector.broadcast %12 : vector<1x16x128xf32> to vector<4x16x128xf32>
    %41 = arith.mulf %39, %40 : vector<4x16x128xf32>
    %42 = vector.shape_cast %41 : vector<4x16x128xf32> to vector<64x128xf32>
    %cst = arith.constant dense<0.000000e+00> : vector<128xf32>
    %43 = vector.multi_reduction <add>, %42, %cst [0] : vector<64x128xf32> to vector<128xf32>
    %44 = vector.shape_cast %43 : vector<128xf32> to vector<1x128xf32>
    %c0_8 = arith.constant 0 : index
    %c0_9 = arith.constant 0 : index
    %c0_10 = arith.constant 0 : index
    %c0_11 = arith.constant 0 : index
    %45 = vector.load %arg4[%c0_8, %c0_9, %c0_10, %c0_11] : memref<1x1x3x128xf32, #tpu.memory_space<vmem>>, vector<1x1x1x128xf32>
    %46 = vector.shape_cast %45 : vector<1x1x1x128xf32> to vector<1x128xf32>
    %47 = vector.shape_cast %44 : vector<1x128xf32> to vector<1x1x1x128xf32>
    tpu.vector_store %arg4[%c0_8, %c0_9, %c0_10, %c0_11], %47 {strides = array<i32>} : memref<1x1x3x128xf32, #tpu.memory_space<vmem>>, vector<1x1x1x128xf32>,
    %48 = arith.addf %28, %30 : vector<4x16x128xf32>
    %c14_i32 = arith.constant 14 : i32
    %49 = tpu.dynamic_rotate %48 by %c14_i32 dim 1 : vector<4x16x128xf32>, i32 -> vector<4x16x128xf32>
    %50 = arith.addf %48, %49 : vector<4x16x128xf32>
    %51 = arith.subf %49, %48 : vector<4x16x128xf32>
    %c126_i32 = arith.constant 126 : i32
    %52 = tpu.dynamic_rotate %50 by %c126_i32 dim 2 : vector<4x16x128xf32>, i32 -> vector<4x16x128xf32>
    %c126_i32_12 = arith.constant 126 : i32
    %53 = tpu.dynamic_rotate %51 by %c126_i32_12 dim 2 : vector<4x16x128xf32>, i32 -> vector<4x16x128xf32>
    %54 = arith.subf %52, %50 : vector<4x16x128xf32>
    %55 = arith.addf %51, %53 : vector<4x16x128xf32>
    %56 = arith.subf %53, %51 : vector<4x16x128xf32>
    %57 = math.absf %54 : vector<4x16x128xf32>
    %58 = math.absf %55 : vector<4x16x128xf32>
    %59 = arith.addf %57, %58 : vector<4x16x128xf32>
    %60 = math.absf %56 : vector<4x16x128xf32>
    %61 = arith.addf %59, %60 : vector<4x16x128xf32>
    %62 = vector.broadcast %19 : vector<1x16x128xf32> to vector<4x16x128xf32>
    %63 = arith.mulf %61, %62 : vector<4x16x128xf32>
    %64 = vector.shape_cast %63 : vector<4x16x128xf32> to vector<64x128xf32>
    %cst_13 = arith.constant dense<0.000000e+00> : vector<128xf32>
    %65 = vector.multi_reduction <add>, %64, %cst_13 [0] : vector<64x128xf32> to vector<128xf32>
    %66 = vector.shape_cast %65 : vector<128xf32> to vector<1x128xf32>
    %c0_14 = arith.constant 0 : index
    %c0_15 = arith.constant 0 : index
    %c1 = arith.constant 1 : index
    %c0_16 = arith.constant 0 : index
    %67 = vector.load %arg4[%c0_14, %c0_15, %c1, %c0_16] : memref<1x1x3x128xf32, #tpu.memory_space<vmem>>, vector<1x1x1x128xf32>
    %68 = vector.shape_cast %67 : vector<1x1x1x128xf32> to vector<1x128xf32>
    %69 = vector.shape_cast %66 : vector<1x128xf32> to vector<1x1x1x128xf32>
    tpu.vector_store %arg4[%c0_14, %c0_15, %c1, %c0_16], %69 {strides = array<i32>} : memref<1x1x3x128xf32, #tpu.memory_space<vmem>>, vector<1x1x1x128xf32>,
    %70 = arith.addf %50, %52 : vector<4x16x128xf32>
    %c12_i32 = arith.constant 12 : i32
    %71 = tpu.dynamic_rotate %70 by %c12_i32 dim 1 : vector<4x16x128xf32>, i32 -> vector<4x16x128xf32>
    %72 = arith.addf %70, %71 : vector<4x16x128xf32>
    %73 = arith.subf %71, %70 : vector<4x16x128xf32>
    %c124_i32 = arith.constant 124 : i32
    %74 = tpu.dynamic_rotate %72 by %c124_i32 dim 2 : vector<4x16x128xf32>, i32 -> vector<4x16x128xf32>
    %c124_i32_17 = arith.constant 124 : i32
    %75 = tpu.dynamic_rotate %73 by %c124_i32_17 dim 2 : vector<4x16x128xf32>, i32 -> vector<4x16x128xf32>
    %76 = arith.subf %74, %72 : vector<4x16x128xf32>
    %77 = arith.addf %73, %75 : vector<4x16x128xf32>
    %78 = arith.subf %75, %73 : vector<4x16x128xf32>
    %79 = math.absf %76 : vector<4x16x128xf32>
    %80 = math.absf %77 : vector<4x16x128xf32>
    %81 = arith.addf %79, %80 : vector<4x16x128xf32>
    %82 = math.absf %78 : vector<4x16x128xf32>
    %83 = arith.addf %81, %82 : vector<4x16x128xf32>
    %84 = vector.broadcast %26 : vector<1x16x128xf32> to vector<4x16x128xf32>
    %85 = arith.mulf %83, %84 : vector<4x16x128xf32>
    %86 = vector.shape_cast %85 : vector<4x16x128xf32> to vector<64x128xf32>
    %cst_18 = arith.constant dense<0.000000e+00> : vector<128xf32>
    %87 = vector.multi_reduction <add>, %86, %cst_18 [0] : vector<64x128xf32> to vector<128xf32>
    %88 = vector.shape_cast %87 : vector<128xf32> to vector<1x128xf32>
    %c0_19 = arith.constant 0 : index
    %c0_20 = arith.constant 0 : index
    %c2 = arith.constant 2 : index
    %c0_21 = arith.constant 0 : index
    %89 = vector.load %arg4[%c0_19, %c0_20, %c2, %c0_21] : memref<1x1x3x128xf32, #tpu.memory_space<vmem>>, vector<1x1x1x128xf32>
    %90 = vector.shape_cast %89 : vector<1x1x1x128xf32> to vector<1x128xf32>
    %91 = vector.shape_cast %88 : vector<1x128xf32> to vector<1x1x1x128xf32>
    tpu.vector_store %arg4[%c0_19, %c0_20, %c2, %c0_21], %91 {strides = array<i32>} : memref<1x1x3x128xf32, #tpu.memory_space<vmem>>, vector<1x1x1x128xf32>,
    return
  }
  func.func @transform_0(%arg0: i32, %arg1: i32) -> (i32, i32, i32) {
    %c0_i32 = arith.constant 0 : i32
    %c0_i32_0 = arith.constant 0 : i32
    return %arg0, %arg1, %c0_i32 : i32, i32, i32
  }
  func.func @transform_1(%arg0: i32, %arg1: i32) -> (i32, i32, i32) {
    %c0_i32 = arith.constant 0 : i32
    %c0_i32_0 = arith.constant 0 : i32
    return %arg0, %arg1, %c0_i32 : i32, i32, i32
  }
  func.func @transform_2(%arg0: i32, %arg1: i32) -> (i32, i32, i32, i32) {
    %c0_i32 = arith.constant 0 : i32
    %c0_i32_0 = arith.constant 0 : i32
    %c0_i32_1 = arith.constant 0 : i32
    return %arg0, %arg1, %c0_i32, %c0_i32_0 : i32, i32, i32, i32
  }
}

</mosaic_0001>

<bundles_post_ra>
// kernel: dwt_loss.1
= control target key start
LH: loop header
LB: loop body
LE: loop exit
PB: predicated region body
PF: predicated region fallthrough
CT: control target
= control target key end

     0   :  { %s936_s9 = smov 0   ;;  %s938_s10 = smov 0   ;;  %s1516_s0 = inlined_call_operand.vmem [shape: f32[8,16,128], index: 0, kind: input, shape index: {}]   ;;  %s1517_s1 = inlined_call_operand.vmem [shape: f32[8,16,128], index: 1, kind: input, shape index: {}]   ;;  %s1518_s2 = inlined_call_operand.vmem [shape: f32[2,1,3,128], index: 2, kind: output, shape index: {}]  }
   0x1   :  { %s940_s11 = smov 0  }
   0x2 LB: > { %s24_s12 = sadd.s32 1, %s911_s10  ;;  %p847_p0 = scmp.ge.s32.totalorder %s915_s11, 1  ;;  %s915_s11 = sphi %s940_s11, %s12_s11   ;;  %s911_s10 = sphi %s938_s10, %s1573_s10   ;;  %s907_s9 = sphi %s936_s9, %s1572_s9  }
   0x3   : > { %p26_p1 = scmp.ge.s32.totalorder %s24_s12, 2  ;;  %p154_p2 = scmp.lt.s32.totalorder %s915_s11, 3 }
   0x5   : > { %s1575_s12 = smov (%p26_p1, %s24_s12), 0  ;;  %p155_p3 = pnand %p847_p0, %p154_p2 }
   0x7   : > { %158 = sbr.rel (%p155_p3) target bundleno = 446 (0x1be), region = 28 }
   0xe   : > { %s848_s13 = sshll.u32 %s907_s9, 2  ;;  %v248_v0 = vlaneseq  ;;  %s917_s21 = smov 127  }
   0xf   : > { %p195_p4 = scmp.lt.s32.totalorder %s848_s13, 7  ;;  %s918_s22 = smov 126  }
  0x10   : > { %v968_v1 = vshrl.u32 %v248_v0, 7  ;;  %s919_s23 = smov 124   ;;  %p217_p5 = scmp.lt.s32.totalorder %s907_s9, 1 }
  0x11   : > { %s1577_s13 = smov (!%p195_p4, %s848_s13), 7 }
  0x12   : > { %s863_s14 = sshll.u32 %s1577_s13, 4  ;;  %vm287_vm0 = vcmp.lt.s32.totalorder %v968_v1, 7  ;;  %vm446_vm1 = vcmp.lt.s32.totalorder %v968_v1, 6  ;;  %vm605_vm2 = vcmp.lt.s32.totalorder %v968_v1, 4  ;;  %s1579_s9 = smov (!%p217_p5, %s907_s9), 1 }
  0x13   : > { %s960_s17 = scalar_lea.vmem %s1516_s0, %s863_s14  ;;  %s965_s20 = scalar_lea.vmem %s1517_s1, %s863_s14 }
  0x14   : > { %v224_v2 = vld [vmem:[%s960_s17] sm:$0xff]  ;;  %v225_v3 = vld [vmem:[%s960_s17 + $0x8] sm:$0xff]  ;;  %v226_v7 = vld [vmem:[%s960_s17 + $0x10] sm:$0xff]  ;;  %s854_s24 = sshll.u32 %s1579_s9, 2 }
  0x15   : > { %v232_v4 = vld [vmem:[%s965_s20] sm:$0xff]  ;;  %v233_v5 = vld [vmem:[%s965_s20 + $0x8] sm:$0xff]  ;;  %v227_v8 = vld [vmem:[%s960_s17 + $0x18] sm:$0xff]  ;;  %s1472_s27 = scalar_lea.vmem %s1518_s2, %s854_s24 }
  0x16   : > { %v240_v6 = vsub.f32 %v224_v2, %v232_v4  ;;  %v241_v9 = vsub.f32 %v225_v3, %v233_v5  ;;  %v234_v10 = vld [vmem:[%s965_s20 + $0x10] sm:$0xff]  ;;  %v235_v11 = vld [vmem:[%s965_s20 + $0x18] sm:$0xff]  ;;  %v228_v12 = vld [vmem:[%s960_s17 + $0x20] sm:$0xff] }
  0x17   : > { %v242_v14 = vsub.f32 %v226_v7, %v234_v10  ;;  %v243_v15 = vsub.f32 %v227_v8, %v235_v11  ;;  %v229_v16 = vld [vmem:[%s960_s17 + $0x28] sm:$0xff]  ;;  %v236_v17 = vld [vmem:[%s965_s20 + $0x20] sm:$0xff]  ;;  %v230_v22 = vld [vmem:[%s960_s17 + $0x30] sm:$0xff] }
  0x18   : > { %v279_v13 = vrot.slane %v240_v6, 1  ;;  %v237_v18 = vld [vmem:[%s965_s20 + $0x28] sm:$0xff]  ;;  %v283_v19 = vrot.slane %v241_v9, 1  ;;  %v244_v20 = vsub.f32 %v228_v12, %v236_v17  ;;  %v238_v23 = vld [vmem:[%s965_s20 + $0x30] sm:$0xff]  ;;  %v231_v31 = vld [vmem:[%s960_s17 + $0x38] sm:$0xff] }
  0x19   : > { %v245_v21 = vsub.f32 %v229_v16, %v237_v18  ;;  %v280_v24 = vrot.slane %v242_v14, 1  ;;  %v284_v25 = vrot.slane %v243_v15, 1  ;;  %v246_v26 = vsub.f32 %v230_v22, %v238_v23  ;;  %v239_v32 = vld [vmem:[%s965_s20 + $0x38] sm:$0xff] }
  0x1a   : > { %v288_v27 = vsel %vm287_vm0, %v279_v13, %v283_v19  ;;  %v292_v28 = vsel %vm287_vm0, %v283_v19, %v279_v13  ;;  %v281_v29 = vrot.slane %v244_v20, 1  ;;  %v247_v38 = vsub.f32 %v231_v31, %v239_v32 }
  0x1b   : > { %v285_v30 = vrot.slane %v245_v21, 1  ;;  %v991_v33 = vadd.f32 %v288_v27, %v240_v6  ;;  %v289_v34 = vsel %vm287_vm0, %v280_v24, %v284_v25  ;;  %v293_v35 = vsel %vm287_vm0, %v284_v25, %v280_v24 }
  0x1c   : > { %v997_v36 = vadd.f32 %v289_v34, %v242_v14  ;;  %v1001_v37 = vadd.f32 %v292_v28, %v241_v9  ;;  %v1005_v39 = vadd.f32 %v293_v35, %v243_v15  ;;  %v282_v41 = vrot.slane %v246_v26, 1 }
  0x1d   : > { %312 = vrot.lane.b32.xlu0 %v991_v33, %s917_s21  ;;  %v290_v40 = vsel %vm287_vm0, %v281_v29, %v285_v30  ;;  %v294_v42 = vsel %vm287_vm0, %v285_v30, %v281_v29  ;;  %v286_v43 = vrot.slane %v247_v38, 1  ;;  %v1031_v50 = vsub.f32 %v292_v28, %v241_v9 }
  0x1e   : > { %316 = vrot.lane.b32.xlu1 %v997_v36, %s917_s21  ;;  %v1013_v44 = vadd.f32 %v290_v40, %v244_v20  ;;  %v1017_v45 = vadd.f32 %v294_v42, %v245_v21  ;;  %v1037_v51 = vsub.f32 %v288_v27, %v240_v6  ;;  %v1039_v52 = vsub.f32 %v289_v34, %v242_v14 }
  0x1f   : > { %v291_v46 = vsel %vm287_vm0, %v282_v41, %v286_v43  ;;  %v295_v47 = vsel %vm287_vm0, %v286_v43, %v282_v41  ;;  %v1041_v53 = vsub.f32 %v293_v35, %v243_v15  ;;  %v1043_v54 = vsub.f32 %v290_v40, %v244_v20 }
  0x20   : > { %v1025_v48 = vadd.f32 %v291_v46, %v246_v26  ;;  %v1029_v49 = vadd.f32 %v295_v47, %v247_v38  ;;  %v1045_v55 = vsub.f32 %v294_v42, %v245_v21  ;;  %v1047_v56 = vsub.f32 %v291_v46, %v246_v26 }
  0x21   : > { %314 = vrot.lane.b32.xlu0 %v1001_v37, %s917_s21  ;;  %v1049_v57 = vsub.f32 %v295_v47, %v247_v38 }
  0x22   : > { %318 = vrot.lane.b32.xlu1 %v1005_v39, %s917_s21 }
  0x25   : > { %320 = vrot.lane.b32.xlu0 %v1013_v44, %s917_s21 }
  0x26   : > { %322 = vrot.lane.b32.xlu1 %v1017_v45, %s917_s21 }
  0x29   : > { %324 = vrot.lane.b32.xlu0 %v1025_v48, %s917_s21 }
  0x2a   : > { %326 = vrot.lane.b32.xlu1 %v1029_v49, %s917_s21 }
  0x8f   : > { %v1051_v58 = vpop.permute.xlu0 %312 }
  0x90   : > { %v1053_v59 = vpop.permute.xlu1 %316  ;;  %v1057_v60 = vadd.f32 %v1051_v58, %v991_v33 }
  0x91   : > { %v432_v61 = vadd.f32 %v1053_v59, %v997_v36 }
  0x92   : > { %v438_v4 = vrot.slane %v1057_v60, 2 }
  0x93   : > { %v1061_v62 = vpop.permute.xlu0 %314  ;;  %v439_v5 = vrot.slane %v432_v61, 2 }
  0x94   : > { %v431_v63 = vadd.f32 %v1061_v62, %v1001_v37  ;;  %v1065_v2 = vpop.permute.xlu1 %318 }
  0x95   : > { %v433_v3 = vadd.f32 %v1065_v2, %v1005_v39 }
  0x96   : > { %v442_v6 = vrot.slane %v431_v63, 2 }
  0x97   : > { %v443_v7 = vrot.slane %v433_v3, 2  ;;  %v1071_v8 = vpop.permute.xlu0 %320 }
  0x98   : > { %v1073_v9 = vpop.permute.xlu1 %322  ;;  %v451_v10 = vsel %vm446_vm1, %v442_v6, %v438_v4  ;;  %v447_v11 = vsel %vm446_vm1, %v438_v4, %v442_v6  ;;  %v434_v12 = vadd.f32 %v1071_v8, %v1013_v44 }
  0x99   : > { %v435_v13 = vadd.f32 %v1073_v9, %v1017_v45  ;;  %v1083_v14 = vadd.f32 %v451_v10, %v431_v63  ;;  %v1086_v15 = vadd.f32 %v447_v11, %v1057_v60  ;;  %v452_v17 = vsel %vm446_vm1, %v443_v7, %v439_v5 }
  0x9a   : > { %v440_v16 = vrot.slane %v434_v12, 2  ;;  %v448_v18 = vsel %vm446_vm1, %v439_v5, %v443_v7  ;;  %v1096_v20 = vadd.f32 %v452_v17, %v433_v3  ;;  %v1140_v40 = vsub.f32 %v451_v10, %v431_v63 }
  0x9b   : > { %v444_v19 = vrot.slane %v435_v13, 2  ;;  %473 = vrot.lane.b32.xlu1 %v1083_v14, %s918_s22  ;;  %471 = vrot.lane.b32.xlu0 %v1086_v15, %s918_s22  ;;  %v1098_v21 = vpop.permute.xlu0 %324  ;;  %v1106_v25 = vadd.f32 %v448_v18, %v432_v61  ;;  %v1146_v41 = vsub.f32 %v448_v18, %v432_v61  ;;  %v1152_v42 = vsub.f32 %v452_v17, %v433_v3 }
  0x9c   : > { %v1100_v22 = vpop.permute.xlu1 %326  ;;  %v436_v23 = vadd.f32 %v1098_v21, %v1025_v48  ;;  %v1179_v63 = vsub.f32 %v447_v11, %v1057_v60  ;;  %v250_v18 = vadd.s32 8, %v968_v1 }
  0x9d   : > { %v437_v24 = vadd.f32 %v1100_v22, %v1029_v49  ;;  %v453_v26 = vsel %vm446_vm1, %v444_v19, %v440_v16  ;;  %v449_v27 = vsel %vm446_vm1, %v440_v16, %v444_v19  ;;  %v252_v19 = vand.u32 127, %v248_v0 }
  0x9e   : > { %v441_v28 = vrot.slane %v436_v23, 2  ;;  %v1116_v30 = vadd.f32 %v453_v26, %v435_v13  ;;  %v1118_v31 = vadd.f32 %v449_v27, %v434_v12  ;;  %v1158_v43 = vsub.f32 %v449_v27, %v434_v12  ;;  %1544 = vst [vmem:[#allocation5_spill] sm:$0xff] %v1179_v63 }
  0x9f   : > { %v445_v29 = vrot.slane %v437_v24, 2  ;;  %477 = vrot.lane.b32.xlu1 %v1096_v20, %s918_s22  ;;  %475 = vrot.lane.b32.xlu0 %v1106_v25, %s918_s22  ;;  %v1164_v46 = vsub.f32 %v453_v26, %v435_v13  ;;  %v1224_v0 = vor.u32 %v252_v19, %v250_v18 }
  0xa1   : > { %v454_v32 = vsel %vm446_vm1, %v445_v29, %v441_v28  ;;  %v450_v34 = vsel %vm446_vm1, %v441_v28, %v445_v29  ;;  %1541 = vst [vmem:[#allocation2_spill] sm:$0xff] %v1164_v46  ;;  %v344_v28 = vsub.f32 %v1051_v58, %v991_v33  ;;  %v345_v33 = vsub.f32 %v1061_v62, %v1001_v37 }
  0xa2   : > { %v1128_v35 = vadd.f32 %v454_v32, %v437_v24  ;;  %v1130_v38 = vadd.f32 %v450_v34, %v436_v23  ;;  %v1170_v47 = vsub.f32 %v450_v34, %v436_v23  ;;  %v1176_v61 = vsub.f32 %v454_v32, %v437_v24 }
  0xa3   : > { %481 = vrot.lane.b32.xlu1 %v1116_v30, %s918_s22  ;;  %479 = vrot.lane.b32.xlu0 %v1118_v31, %s918_s22  ;;  %v346_v34 = vsub.f32 %v1053_v59, %v997_v36  ;;  %v256_v62 = vand.u32 1, %v1224_v0 }
  0xa4   : > { %1542 = vst [vmem:[#allocation3_spill] sm:$0xff] %v1170_v47  ;;  %1543 = vst [vmem:[#allocation4_spill] sm:$0xff] %v1176_v61 }
  0xa5   : > { %v370_v37 = vand.u32 2147483647, %v346_v34  ;;  %vm1270_vm3 = vcmp.eq.s32.totalorder %v256_v62, 0 }
  0xa7   : > { %485 = vrot.lane.b32.xlu1 %v1128_v35, %s918_s22  ;;  %483 = vrot.lane.b32.xlu0 %v1130_v38, %s918_s22 }
  0xab   : > { %330 = vrot.lane.b32.xlu1 %v1031_v50, %s917_s21  ;;  %328 = vrot.lane.b32.xlu0 %v1037_v51, %s917_s21 }
  0xaf   : > { %489 = vrot.lane.b32.xlu1 %v1140_v40, %s918_s22  ;;  %332 = vrot.lane.b32.xlu0 %v1039_v52, %s917_s21 }
  0xb3   : > { %491 = vrot.lane.b32.xlu1 %v1146_v41, %s918_s22  ;;  %334 = vrot.lane.b32.xlu0 %v1041_v53, %s917_s21 }
  0xb7   : > { %493 = vrot.lane.b32.xlu1 %v1152_v42, %s918_s22  ;;  %336 = vrot.lane.b32.xlu0 %v1043_v54, %s917_s21 }
  0xbb   : > { %495 = vrot.lane.b32.xlu1 %v1158_v43, %s918_s22  ;;  %338 = vrot.lane.b32.xlu0 %v1045_v55, %s917_s21 }
  0xbf   : > { %497 = vrot.lane.b32.xlu1 %v1164_v46, %s918_s22  ;;  %340 = vrot.lane.b32.xlu0 %v1047_v56, %s917_s21 }
  0xc3   : > { %499 = vrot.lane.b32.xlu1 %v1170_v47, %s918_s22  ;;  %342 = vrot.lane.b32.xlu0 %v1049_v57, %s917_s21 }
  0xc7   : > { %501 = vrot.lane.b32.xlu1 %v1176_v61, %s918_s22  ;;  %487 = vrot.lane.b32.xlu0 %v1179_v63, %s918_s22 }
 0x10d   : > { %v1185_v3 = vpop.permute.xlu1 %473  ;;  %v1187_v4 = vpop.permute.xlu0 %471 }
 0x10e   : > { %v590_v5 = vadd.f32 %v1185_v3, %v1083_v14  ;;  %v589_v6 = vadd.f32 %v1187_v4, %v1086_v15 }
 0x110   : > { %v601_v7 = vrot.slane %v590_v5, 4  ;;  %v597_v10 = vrot.slane %v589_v6, 4 }
 0x111   : > { %v1194_v60 = vpop.permute.xlu1 %477  ;;  %v1196_v11 = vpop.permute.xlu0 %475 }
 0x112   : > { %v592_v12 = vadd.f32 %v1194_v60, %v1096_v20  ;;  %v591_v13 = vadd.f32 %v1196_v11, %v1106_v25  ;;  %v610_v16 = vsel %vm605_vm2, %v601_v7, %v597_v10  ;;  %v606_v17 = vsel %vm605_vm2, %v597_v10, %v601_v7 }
 0x113   : > { %v1210_v24 = vadd.f32 %v610_v16, %v590_v5  ;;  %v1212_v26 = vadd.f32 %v606_v17, %v589_v6  ;;  %v1227_v7 = vor.u32 %v252_v19, %v968_v1  ;;  %v1239_v10 = vsub.f32 %v610_v16, %v590_v5 }
 0x114   : > { %v602_v29 = vrot.slane %v592_v12, 4  ;;  %v598_v32 = vrot.slane %v591_v13, 4  ;;  %v369_v16 = vand.u32 2147483647, %v345_v33 }
 0x115   : > { %v1208_v23 = vpop.permute.xlu1 %481  ;;  %1545 = vst [vmem:[#allocation6_spill] sm:$0xff] %v1210_v24  ;;  %1546 = vst [vmem:[#allocation7_spill] sm:$0xff] %v1212_v26  ;;  %v1214_v27 = vpop.permute.xlu0 %479  ;;  %632 = vrot.lane.b32.xlu1 %v1210_v24, %s919_s23  ;;  %630 = vrot.lane.b32.xlu0 %v1212_v26, %s919_s23  ;;  %v1241_v26 = vsub.f32 %v606_v17, %v589_v6  ;;  %v368_v24 = vand.u32 2147483647, %v344_v28  ;;  %v255_v5 = vand.u32 1, %v1227_v7 }
 0x116   : > { %v1233_v58 = vadd.f32 %v1208_v23, %v1116_v30  ;;  %v593_v36 = vadd.f32 %v1214_v27, %v1118_v31  ;;  %1547 = vst [vmem:[#allocation8_spill] sm:$0xff] %v1239_v10  ;;  %v607_v19 = vsel %vm605_vm2, %v598_v32, %v602_v29  ;;  %v347_v6 = vsub.f32 %v1065_v2, %v1005_v39 }
 0x117   : > { %1548 = vst [vmem:[#allocation9_spill] sm:$0xff] %v1241_v26  ;;  %v348_v17 = vsub.f32 %v1071_v8, %v1013_v44  ;;  %v611_v28 = vsel %vm605_vm2, %v602_v29, %v598_v32  ;;  %v1260_v47 = vsub.f32 %v607_v19, %v591_v13  ;;  %v349_v2 = vsub.f32 %v1073_v9, %v1017_v45 }
 0x118   : > { %v603_v34 = vrot.slane %v1233_v58, 4  ;;  %vm1278_vm4 = vcmp.eq.s32.totalorder %v255_v5, 0  ;;  %v1290_v32 = vsub.f32 %v611_v28, %v592_v12  ;;  %v264_v8 = vand.u32 3, %v1224_v0 }
 0x119   : > { %v1237_v59 = vpop.permute.xlu1 %485  ;;  %v1243_v18 = vpop.permute.xlu0 %483  ;;  %648 = vrot.lane.b32.xlu1 %v1239_v10, %s919_s23  ;;  %646 = vrot.lane.b32.xlu0 %v1241_v26, %s919_s23  ;;  %v599_v10 = vrot.slane %v593_v36, 4  ;;  %1549 = vst [vmem:[#allocation10_spill] sm:$0xff] %v1260_v47  ;;  %v1262_v26 = vadd.f32 %v607_v19, %v591_v13  ;;  %v1292_v19 = vadd.f32 %v611_v28, %v592_v12 }
 0x11a   : > { %v1286_v9 = vadd.f32 %v1237_v59, %v1128_v35  ;;  %1555 = vst [vmem:[#allocation12_spill] sm:$0xff] %v1290_v32  ;;  %v1296_v5 = vadd.f32 %v1243_v18, %v1130_v38  ;;  %vm1336_vm5 = vcmp.eq.s32.totalorder %v264_v8, 0 }
 0x11b   : > { %1550 = vst [vmem:[#allocation11_spill] sm:$0xff] %v1262_v26  ;;  %1556 = vst [vmem:[#allocation13_spill] sm:$0xff] %v1292_v19 }
 0x11d   : > { %v331_v61 = vpop.permute.xlu1 %330  ;;  %v329_v63 = vpop.permute.xlu0 %328  ;;  %650 = vrot.lane.b32.xlu1 %v1260_v47, %s919_s23  ;;  %634 = vrot.lane.b32.xlu0 %v1262_v26, %s919_s23  ;;  %v604_v47 = vrot.slane %v1286_v9, 4 }
 0x11e   : > { %v353_v33 = vadd.f32 %v331_v61, %v1031_v50  ;;  %v361_v46 = vsub.f32 %v331_v61, %v1031_v50  ;;  %v352_v39 = vadd.f32 %v329_v63, %v1037_v51  ;;  %v360_v44 = vsub.f32 %v329_v63, %v1037_v51 }
 0x11f   : > { %v350_v50 = vsub.f32 %v1098_v21, %v1025_v48 }
 0x120   : > { %v377_v51 = vand.u32 2147483647, %v353_v33  ;;  %v393_v61 = vand.u32 2147483647, %v361_v46  ;;  %v376_v45 = vand.u32 2147483647, %v352_v39  ;;  %v608_v46 = vsel %vm605_vm2, %v599_v10, %v603_v34 }
 0x121   : > { %v392_v63 = vand.u32 2147483647, %v360_v44  ;;  %v1288_v29 = vpop.permute.xlu1 %489  ;;  %v333_v62 = vpop.permute.xlu0 %332  ;;  %v1533_v33 = vmov 0.0   ;;  %652 = vrot.lane.b32.xlu1 %v1290_v32, %s919_s23  ;;  %636 = vrot.lane.b32.xlu0 %v1292_v19, %s919_s23  ;;  %v1321_v26 = vsub.f32 %v608_v46, %v593_v36  ;;  %v1323_v32 = vadd.f32 %v608_v46, %v593_v36 }
 0x122   : > { %v385_v48 = vadd.f32 %v377_v51, %v369_v16  ;;  %v384_v21 = vadd.f32 %v376_v45, %v368_v24  ;;  %v1303_v39 = vsel %vm1270_vm3, 1.0, %v1533_v33  ;;  %v1308_v12 = vsel %vm1278_vm4, 1.0, %v1533_v33 }
 0x123   : > { %v354_v24 = vadd.f32 %v333_v62, %v1039_v52  ;;  %v362_v16 = vsub.f32 %v333_v62, %v1039_v52  ;;  %v612_v51 = vsel %vm605_vm2, %v603_v34, %v599_v10  ;;  %v600_v52 = vrot.slane %v1296_v5, 4 }
 0x124   : > { %v401_v28 = vadd.f32 %v393_v61, %v385_v48  ;;  %v400_v44 = vadd.f32 %v392_v63, %v384_v21  ;;  %v371_v62 = vand.u32 2147483647, %v347_v6  ;;  %v351_v10 = vsub.f32 %v1100_v22, %v1029_v49 }
 0x125   : > { %v378_v13 = vand.u32 2147483647, %v354_v24  ;;  %v394_v45 = vand.u32 2147483647, %v362_v16  ;;  %v1319_v33 = vpop.permute.xlu1 %491  ;;  %v335_v19 = vpop.permute.xlu0 %334  ;;  %654 = vrot.lane.b32.xlu1 %v1321_v26, %s919_s23  ;;  %638 = vrot.lane.b32.xlu0 %v1323_v32, %s919_s23  ;;  %v372_v48 = vand.u32 2147483647, %v348_v17  ;;  %v1344_v22 = vsub.f32 %v612_v51, %v1233_v58 }
 0x126   : > { %v409_v61 = vmul.f32 %v1303_v39, %v401_v28  ;;  %v408_v63 = vmul.f32 %v1308_v12, %v400_v44  ;;  %v355_v36 = vadd.f32 %v335_v19, %v1041_v53  ;;  %v363_v6 = vsub.f32 %v335_v19, %v1041_v53 }
 0x127   : > { %v386_v34 = vadd.f32 %v378_v13, %v370_v37  ;;  %v1347_v37 = vadd.f32 %v612_v51, %v1233_v58  ;;  %v373_v44 = vand.u32 2147483647, %v349_v2  ;;  %v1349_v17 = vand.u32 2147483647, %v350_v50 }
 0x128   : > { %v416_v21 = vadd.f32 %v409_v61, %v408_v63  ;;  %v379_v16 = vand.u32 2147483647, %v355_v36  ;;  %v395_v8 = vand.u32 2147483647, %v363_v6  ;;  %v609_v13 = vsel %vm605_vm2, %v600_v52, %v604_v47 }
 0x129   : > { %v402_v24 = vadd.f32 %v394_v45, %v386_v34  ;;  %v1341_v49 = vpop.permute.xlu1 %493  ;;  %v337_v28 = vpop.permute.xlu0 %336  ;;  %v1353_v61 = vand.u32 2147483647, %v351_v10  ;;  %v263_v19 = vand.u32 3, %v1227_v7  ;;  %656 = vrot.lane.b32.xlu1 %v1344_v22, %s919_s23  ;;  %640 = vrot.lane.b32.xlu0 %v1347_v37, %s919_s23  ;;  %v504_v58 = vsub.f32 %v1185_v3, %v1083_v14 }
 0x12a   : > { %v387_v45 = vadd.f32 %v379_v16, %v371_v62  ;;  %v1559_v2 = vmov 0.0   ;;  %v356_v51 = vadd.f32 %v337_v28, %v1043_v54  ;;  %v364_v63 = vsub.f32 %v337_v28, %v1043_v54 }
 0x12b   : > { %v410_v53 = vmul.f32 %v1308_v12, %v402_v24  ;;  %v1366_v50 = vsel %vm1336_vm5, 1.0, %v1559_v2  ;;  %v1373_v36 = vsub.f32 %v609_v13, %v1296_v5  ;;  %v1376_v6 = vadd.f32 %v609_v13, %v1296_v5 }
 0x12c   : > { %v403_v62 = vadd.f32 %v395_v8, %v387_v45  ;;  %v503_v3 = vsub.f32 %v1187_v4, %v1086_v15  ;;  %v380_v46 = vand.u32 2147483647, %v356_v51  ;;  %v396_v24 = vand.u32 2147483647, %v364_v63 }
 0x12d   : > { %v417_v10 = vadd.f32 %v416_v21, %v410_v53  ;;  %v1370_v34 = vpop.permute.xlu1 %495  ;;  %v339_v14 = vpop.permute.xlu0 %338  ;;  %v613_v16 = vsel %vm605_vm2, %v604_v47, %v600_v52  ;;  %v506_v54 = vsub.f32 %v1194_v60, %v1096_v20  ;;  %v505_v21 = vsub.f32 %v1196_v11, %v1106_v25  ;;  %658 = vrot.lane.b32.xlu1 %v1373_v36, %s919_s23 }
 0x12e   : > { %vm265_vm6 = vcmp.eq.s32.totalorder %v263_v19, 0  ;;  %v411_v28 = vmul.f32 %v1303_v39, %v403_v62  ;;  %642 = vrot.lane.b32.xlu0 %v1376_v6, %s919_s23  ;;  %v508_v15 = vsub.f32 %v1208_v23, %v1116_v30  ;;  %v388_v1 = vadd.f32 %v380_v46, %v372_v48 }
 0x12f   : > { %v357_v47 = vadd.f32 %v339_v14, %v1045_v55  ;;  %v365_v20 = vsub.f32 %v339_v14, %v1045_v55  ;;  %v512_v25 = vadd.f32 %v1288_v29, %v1140_v40  ;;  %v1400_v11 = vsub.f32 %v613_v16, %v1286_v9 }
 0x130   : > { %v418_v4 = vadd.f32 %v417_v10, %v411_v28  ;;  %v1403_v5 = vadd.f32 %v613_v16, %v1286_v9  ;;  %v1406_v30 = vsel %vm265_vm6, 1.0, %v1559_v2  ;;  %v404_v23 = vadd.f32 %v396_v24, %v388_v1 }
 0x131   : > { %v1397_v60 = vpop.permute.xlu1 %497  ;;  %v341_v52 = vpop.permute.xlu0 %340  ;;  %v381_v48 = vand.u32 2147483647, %v357_v47  ;;  %v397_v8 = vand.u32 2147483647, %v365_v20  ;;  %v528_v55 = vand.u32 2147483647, %v504_v58  ;;  %v507_v19 = vsub.f32 %v1214_v27, %v1118_v31  ;;  %660 = vrot.lane.b32.xlu1 %v1400_v11, %s919_s23 }
 0x132   : > { %v527_v13 = vand.u32 2147483647, %v503_v3  ;;  %v530_v53 = vand.u32 2147483647, %v506_v54  ;;  %644 = vrot.lane.b32.xlu0 %v1403_v5, %s919_s23  ;;  %v412_v9 = vmul.f32 %v1308_v12, %v404_v23  ;;  %v358_v51 = vadd.f32 %v341_v52, %v1047_v56 }
 0x133   : > { %v389_v45 = vadd.f32 %v381_v48, %v373_v44  ;;  %v366_v63 = vsub.f32 %v341_v52, %v1047_v56  ;;  %v529_v10 = vand.u32 2147483647, %v505_v21  ;;  %v1417_v58 = vand.u32 2147483647, %v508_v15 }
 0x134   : > { %v536_v62 = vand.u32 2147483647, %v512_v25  ;;  %v513_v31 = vadd.f32 %v1319_v33, %v1146_v41  ;;  %v419_v14 = vadd.f32 %v418_v4, %v412_v9  ;;  %v382_v46 = vand.u32 2147483647, %v358_v51  ;;  %v1561_v9 = vld [vmem:[#allocation5_spill] sm:$0xff] }
 0x135   : > { %v343_v27 = vpop.permute.xlu0 %342  ;;  %v405_v3 = vadd.f32 %v397_v8, %v389_v45  ;;  %v398_v24 = vand.u32 2147483647, %v366_v63  ;;  %v1421_v16 = vpop.permute.xlu1 %499  ;;  %v531_v54 = vand.u32 2147483647, %v507_v19  ;;  %v510_v44 = vsub.f32 %v1237_v59, %v1128_v35  ;;  %v1560_v19 = vld [vmem:[#allocation2_spill] sm:$0xff] }
 0x136   : > { %v520_v56 = vsub.f32 %v1288_v29, %v1140_v40  ;;  %v514_v21 = vadd.f32 %v1341_v49, %v1152_v42  ;;  %v390_v15 = vadd.f32 %v382_v46, %v1349_v17  ;;  %v359_v1 = vadd.f32 %v343_v27, %v1049_v57 }
 0x137   : > { %v413_v28 = vmul.f32 %v1303_v39, %v405_v3  ;;  %v367_v47 = vsub.f32 %v343_v27, %v1049_v57  ;;  %v544_v20 = vadd.f32 %v536_v62, %v528_v55  ;;  %v521_v25 = vsub.f32 %v1319_v33, %v1146_v41  ;;  %v1562_v27 = vld [vmem:[#allocation3_spill] sm:$0xff] }
 0x138   : > { %v537_v4 = vand.u32 2147483647, %v513_v31  ;;  %v515_v35 = vadd.f32 %v1370_v34, %v1158_v43  ;;  %v406_v29 = vadd.f32 %v398_v24, %v390_v15  ;;  %v383_v52 = vand.u32 2147483647, %v359_v1 }
 0x139   : > { %v488_v40 = vpop.permute.xlu0 %487  ;;  %v420_v59 = vadd.f32 %v419_v14, %v413_v28  ;;  %v399_v23 = vand.u32 2147483647, %v367_v47  ;;  %v509_v17 = vsub.f32 %v1243_v18, %v1130_v38  ;;  %v552_v48 = vand.u32 2147483647, %v520_v56  ;;  %v502_v33 = vpop.permute.xlu1 %501  ;;  %v1563_v56 = vld [vmem:[#allocation4_spill] sm:$0xff] }
 0x13a   : > { %v538_v8 = vand.u32 2147483647, %v514_v21  ;;  %v516_v57 = vadd.f32 %v1397_v60, %v1560_v19  ;;  %v414_v55 = vmul.f32 %v1308_v12, %v406_v29  ;;  %v391_v41 = vadd.f32 %v383_v52, %v1353_v61 }
 0x13b   : > { %v511_v45 = vadd.f32 %v488_v40, %v1561_v9  ;;  %v519_v51 = vsub.f32 %v488_v40, %v1561_v9  ;;  %v560_v63 = vadd.f32 %v552_v48, %v544_v20  ;;  %v545_v62 = vadd.f32 %v537_v4, %v529_v10 }
 0x13c   : > { %v522_v31 = vsub.f32 %v1341_v49, %v1152_v42  ;;  %v539_v38 = vand.u32 2147483647, %v515_v35  ;;  %v553_v18 = vand.u32 2147483647, %v521_v25  ;;  %v517_v14 = vadd.f32 %v1421_v16, %v1562_v27 }
 0x13d   : > { %v407_v3 = vadd.f32 %v399_v23, %v391_v41  ;;  %v535_v12 = vand.u32 2147483647, %v511_v45  ;;  %v546_v46 = vadd.f32 %v538_v8, %v530_v53  ;;  %v523_v61 = vsub.f32 %v1370_v34, %v1158_v43 }
 0x13e   : > { %v540_v24 = vand.u32 2147483647, %v516_v57  ;;  %v518_v21 = vadd.f32 %v502_v33, %v1563_v56  ;;  %v421_v28 = vadd.f32 %v420_v59, %v414_v55  ;;  %v551_v42 = vand.u32 2147483647, %v519_v51 }
 0x13f   : > { %v415_v10 = vmul.f32 %v1303_v39, %v407_v3  ;;  %v543_v15 = vadd.f32 %v535_v12, %v527_v13  ;;  %v561_v49 = vadd.f32 %v553_v18, %v545_v62  ;;  %v554_v1 = vand.u32 2147483647, %v522_v31 }
 0x140   : > { %v547_v47 = vadd.f32 %v539_v38, %v531_v54  ;;  %v524_v20 = vsub.f32 %v1397_v60, %v1560_v19  ;;  %v533_v25 = vand.u32 2147483647, %v509_v17  ;;  %v541_v4 = vand.u32 2147483647, %v517_v14 }
 0x141   : > { %v422_v43 = vadd.f32 %v421_v28, %v415_v10  ;;  %v559_v34 = vadd.f32 %v551_v42, %v543_v15  ;;  %v568_v53 = vmul.f32 %v1366_v50, %v560_v63  ;;  %v562_v35 = vadd.f32 %v554_v1, %v546_v46 }
 0x142   : > { %v555_v40 = vand.u32 2147483647, %v523_v61  ;;  %v548_v39 = vadd.f32 %v540_v24, %v1417_v58  ;;  %v525_v13 = vsub.f32 %v1421_v16, %v1562_v27  ;;  %v542_v59 = vand.u32 2147483647, %v518_v21 }
 0x143   : > { %v423_v54 = vrot.slane %v422_v43, 4  ;;  %v567_v60 = vmul.f32 %v1406_v30, %v559_v34  ;;  %v534_v29 = vand.u32 2147483647, %v510_v44  ;;  %v569_v52 = vmul.f32 %v1406_v30, %v561_v49  ;;  %v1566_v34 = vld [vmem:[#allocation6_spill] sm:$0xff] }
 0x144   : > { %v563_v23 = vadd.f32 %v555_v40, %v547_v47  ;;  %v556_v17 = vand.u32 2147483647, %v524_v20  ;;  %v549_v48 = vadd.f32 %v541_v4, %v533_v25  ;;  %v526_v19 = vsub.f32 %v502_v33, %v1563_v56  ;;  %v1564_v25 = vld [vmem:[#allocation8_spill] sm:$0xff]  ;;  %v1565_v4 = vld [vmem:[#allocation9_spill] sm:$0xff] }
 0x145   : > { %v424_v8 = vadd.f32 %v423_v54, %v422_v43  ;;  %v575_v57 = vadd.f32 %v568_v53, %v567_v60  ;;  %v570_v58 = vmul.f32 %v1366_v50, %v562_v35  ;;  %v557_v16 = vand.u32 2147483647, %v525_v13  ;;  %v1568_v54 = vld [vmem:[#allocation10_spill] sm:$0xff] }
 0x146   : > { %v564_v55 = vadd.f32 %v556_v17, %v548_v39  ;;  %v550_v9 = vadd.f32 %v542_v59, %v534_v29  ;;  %v571_v44 = vmul.f32 %v1406_v30, %v563_v23  ;;  %v558_v62 = vand.u32 2147483647, %v526_v19 }
 0x147   : > { %v425_v41 = vrot.slane %v424_v8, 2  ;;  %v576_v45 = vadd.f32 %v575_v57, %v569_v52  ;;  %v565_v51 = vadd.f32 %v557_v16, %v549_v48  ;;  %v272_v13 = vand.u32 7, %v1224_v0  ;;  %v1569_v52 = vld [vmem:[#allocation11_spill] sm:$0xff]  ;;  %v1570_v0 = vld [vmem:[#allocation12_spill] sm:$0xff] }
 0x148   : > { %v572_v38 = vmul.f32 %v1366_v50, %v564_v55  ;;  %v566_v27 = vadd.f32 %v558_v62, %v550_v9 }
 0x149   : > { %v426_v63 = vadd.f32 %v425_v41, %v424_v8  ;;  %v577_v31 = vadd.f32 %v576_v45, %v570_v58  ;;  %v573_v14 = vmul.f32 %v1406_v30, %v565_v51  ;;  %v271_v8 = vand.u32 7, %v1227_v7 }
 0x14a   : > { %v574_v46 = vmul.f32 %v1366_v50, %v566_v27  ;;  %v1567_v50 = vld [vmem:[#allocation7_spill] sm:$0xff]  ;;  %vm274_vm7 = vcmp.eq.s32.totalorder %v272_v13, 0 }
 0x14b   : > { %v427_v18 = vrot.slane %v426_v63, 1  ;;  %v578_v33 = vadd.f32 %v577_v31, %v571_v44  ;;  %vm273_vm8 = vcmp.eq.s32.totalorder %v271_v8, 0 }
 0x14d   : > { %v428_v3 = vadd.f32 %v427_v18, %v426_v63  ;;  %v579_v12 = vadd.f32 %v578_v33, %v572_v38  ;;  %v1571_v63 = vld [vmem:[#allocation13_spill] sm:$0xff] }
 0x14f   : > { %429 = vst [vmem:[%s1472_s27] sm:$0x1] %v428_v3  ;;  %v580_v61 = vadd.f32 %v579_v12, %v573_v14  ;;  %v860_v12 = vsel %vm274_vm7, 1.0, %v1559_v2 }
 0x151   : > { %v581_v24 = vadd.f32 %v580_v61, %v574_v46 }
 0x153   : > { %v582_v56 = vrot.slane %v581_v24, 4 }
 0x155   : > { %v583_v21 = vadd.f32 %v582_v56, %v581_v24  ;;  %v859_v56 = vsel %vm273_vm8, 1.0, %v1559_v2 }
 0x157   : > { %v584_v28 = vrot.slane %v583_v21, 2 }
 0x159   : > { %v585_v10 = vadd.f32 %v584_v28, %v583_v21 }
 0x15b   : > { %v586_v15 = vrot.slane %v585_v10, 1 }
 0x15d   : > { %v587_v42 = vadd.f32 %v586_v15, %v585_v10 }
 0x15f   : > { %588 = vst [vmem:[%s1472_s27 + $0x1] sm:$0x1] %v587_v42 }
 0x187   : > { %v633_v49 = vpop.permute.xlu1 %632  ;;  %v631_v1 = vpop.permute.xlu0 %630 }
 0x188   : > { %v663_v53 = vsub.f32 %v633_v49, %v1566_v34  ;;  %v662_v35 = vsub.f32 %v631_v1, %v1567_v50 }
 0x18a   : > { %v687_v17 = vand.u32 2147483647, %v663_v53  ;;  %v686_v19 = vand.u32 2147483647, %v662_v35 }
 0x18b   : > { %v649_v47 = vpop.permute.xlu1 %648  ;;  %v647_v20 = vpop.permute.xlu0 %646 }
 0x18c   : > { %v671_v30 = vadd.f32 %v649_v47, %v1564_v25  ;;  %v670_v43 = vadd.f32 %v647_v20, %v1565_v4  ;;  %v679_v48 = vsub.f32 %v649_v47, %v1564_v25  ;;  %v678_v57 = vsub.f32 %v647_v20, %v1565_v4 }
 0x18e   : > { %v695_v60 = vand.u32 2147483647, %v671_v30  ;;  %v694_v29 = vand.u32 2147483647, %v670_v43  ;;  %v711_v31 = vand.u32 2147483647, %v679_v48 }
 0x18f   : > { %v651_v40 = vpop.permute.xlu1 %650  ;;  %v635_v39 = vpop.permute.xlu0 %634  ;;  %v710_v7 = vand.u32 2147483647, %v678_v57 }
 0x190   : > { %v672_v59 = vadd.f32 %v651_v40, %v1568_v54  ;;  %v664_v23 = vsub.f32 %v635_v39, %v1569_v52  ;;  %v703_v45 = vadd.f32 %v695_v60, %v687_v17  ;;  %v702_v44 = vadd.f32 %v694_v29, %v686_v19 }
 0x191   : > { %v680_v51 = vsub.f32 %v651_v40, %v1568_v54 }
 0x192   : > { %v696_v58 = vand.u32 2147483647, %v672_v59  ;;  %v688_v55 = vand.u32 2147483647, %v664_v23  ;;  %v719_v24 = vadd.f32 %v711_v31, %v703_v45  ;;  %v718_v21 = vadd.f32 %v710_v7, %v702_v44 }
 0x193   : > { %v653_v16 = vpop.permute.xlu1 %652  ;;  %v637_v41 = vpop.permute.xlu0 %636  ;;  %v712_v28 = vand.u32 2147483647, %v680_v51 }
 0x194   : > { %v673_v9 = vadd.f32 %v653_v16, %v1570_v0  ;;  %v665_v62 = vsub.f32 %v637_v41, %v1571_v63  ;;  %v704_v18 = vadd.f32 %v696_v58, %v688_v55  ;;  %v681_v27 = vsub.f32 %v653_v16, %v1570_v0 }
 0x195   : > { %v727_v34 = vmul.f32 %v860_v12, %v719_v24  ;;  %v726_v2 = vmul.f32 %v859_v56, %v718_v21 }
 0x196   : > { %v697_v38 = vand.u32 2147483647, %v673_v9  ;;  %v689_v33 = vand.u32 2147483647, %v665_v62  ;;  %v720_v1 = vadd.f32 %v712_v28, %v704_v18  ;;  %v713_v47 = vand.u32 2147483647, %v681_v27 }
 0x197   : > { %v655_v14 = vpop.permute.xlu1 %654  ;;  %v639_v3 = vpop.permute.xlu0 %638  ;;  %v734_v52 = vadd.f32 %v727_v34, %v726_v2 }
 0x198   : > { %v674_v46 = vadd.f32 %v655_v14, %v1321_v26  ;;  %v666_v61 = vsub.f32 %v639_v3, %v1323_v32  ;;  %v705_v10 = vadd.f32 %v697_v38, %v689_v33  ;;  %v682_v15 = vsub.f32 %v655_v14, %v1321_v26 }
 0x199   : > { %v728_v26 = vmul.f32 %v859_v56, %v720_v1 }
 0x19a   : > { %v698_v42 = vand.u32 2147483647, %v674_v46  ;;  %v690_v49 = vand.u32 2147483647, %v666_v61  ;;  %v721_v53 = vadd.f32 %v713_v47, %v705_v10  ;;  %v714_v50 = vand.u32 2147483647, %v682_v15 }
 0x19b   : > { %v657_v20 = vpop.permute.xlu1 %656  ;;  %v641_v25 = vpop.permute.xlu0 %640  ;;  %v735_v8 = vadd.f32 %v734_v52, %v728_v26 }
 0x19c   : > { %v706_v30 = vadd.f32 %v698_v42, %v690_v49  ;;  %v675_v4 = vadd.f32 %v657_v20, %v1344_v22  ;;  %v683_v43 = vsub.f32 %v657_v20, %v1344_v22  ;;  %v667_v32 = vsub.f32 %v641_v25, %v1347_v37 }
 0x19d   : > { %v729_v37 = vmul.f32 %v860_v12, %v721_v53 }
 0x19e   : > { %v699_v35 = vand.u32 2147483647, %v675_v4  ;;  %v691_v40 = vand.u32 2147483647, %v667_v32  ;;  %v722_v54 = vadd.f32 %v714_v50, %v706_v30  ;;  %v715_v59 = vand.u32 2147483647, %v683_v43 }
 0x19f   : > { %v659_v39 = vpop.permute.xlu1 %658  ;;  %v736_v44 = vadd.f32 %v735_v8, %v729_v37 }
 0x1a0   : > { %v643_v13 = vpop.permute.xlu0 %642  ;;  %v707_v60 = vadd.f32 %v699_v35, %v691_v40  ;;  %v676_v29 = vadd.f32 %v659_v39, %v1373_v36  ;;  %v684_v23 = vsub.f32 %v659_v39, %v1373_v36  ;;  %v730_v55 = vmul.f32 %v859_v56, %v722_v54 }
 0x1a1   : > { %v668_v22 = vsub.f32 %v643_v13, %v1376_v6 }
 0x1a2   : > { %v723_v17 = vadd.f32 %v715_v59, %v707_v60  ;;  %v700_v48 = vand.u32 2147483647, %v676_v29  ;;  %v716_v9 = vand.u32 2147483647, %v684_v23  ;;  %v737_v62 = vadd.f32 %v736_v44, %v730_v55 }
 0x1a3   : > { %v692_v19 = vand.u32 2147483647, %v668_v22  ;;  %v661_v57 = vpop.permute.xlu1 %660 }
 0x1a4   : > { %v645_v58 = vpop.permute.xlu0 %644  ;;  %v677_v16 = vadd.f32 %v661_v57, %v1400_v11  ;;  %v685_v41 = vsub.f32 %v661_v57, %v1400_v11  ;;  %v731_v36 = vmul.f32 %v860_v12, %v723_v17 }
 0x1a5   : > { %v669_v0 = vsub.f32 %v645_v58, %v1403_v5  ;;  %v708_v45 = vadd.f32 %v700_v48, %v692_v19 }
 0x1a6   : > { %v701_v51 = vand.u32 2147483647, %v677_v16  ;;  %v717_v31 = vand.u32 2147483647, %v685_v41  ;;  %v738_v18 = vadd.f32 %v737_v62, %v731_v36 }
 0x1a7   : > { %v693_v6 = vand.u32 2147483647, %v669_v0  ;;  %v724_v63 = vadd.f32 %v716_v9, %v708_v45 }
 0x1a9   : > { %v709_v38 = vadd.f32 %v701_v51, %v693_v6  ;;  %v732_v7 = vmul.f32 %v859_v56, %v724_v63 }
 0x1ab   : > { %v725_v27 = vadd.f32 %v717_v31, %v709_v38  ;;  %v739_v33 = vadd.f32 %v738_v18, %v732_v7 }
 0x1ad   : > { %v733_v14 = vmul.f32 %v860_v12, %v725_v27 }
 0x1af   : > { %v740_v3 = vadd.f32 %v739_v33, %v733_v14 }
 0x1b1   : > { %v741_v11 = vrot.slane %v740_v3, 4 }
 0x1b3   : > { %v742_v46 = vadd.f32 %v741_v11, %v740_v3 }
 0x1b5   : > { %v743_v5 = vrot.slane %v742_v46, 2 }
 0x1b7   : > { %v744_v61 = vadd.f32 %v743_v5, %v742_v46 }
 0x1b9   : > { %v745_v24 = vrot.slane %v744_v61, 1 }
 0x1bb   : > { %v746_v21 = vadd.f32 %v745_v24, %v744_v61 }
 0x1bd   : > { %747 = vst [vmem:[%s1472_s27 + $0x2] sm:$0x1] %v746_v21 }
 0x1be PF: > { %s12_s11 = sadd.s32 1, %s915_s11   ;;  %s1572_s9 = smov %s911_s10 }
 0x1bf   : > { %p9_p6 = scmp.ge.s32.totalorder %s12_s11, 4   ;;  %s1573_s10 = smov %s1575_s12 }
 0x1c1   :  { %11 = sbr.rel (!%p9_p6) target bundleno = 2 (0x2), region = 61 }

</bundles_post_ra>
